<compile_context>
chip_gen: v5e
topology: v5e:2x2
jax: 0.10.0
libtpu: 0.0.40
codegen_flags: <defaults>
</compile_context>

<pallas_src>
import functools

import jax
import jax.numpy as jnp
from jax.experimental import pallas as pl
from jax.experimental.pallas import tpu as pltpu


def affine_kernel(coef_ref, x_ref, o_ref):
    """o[i, j] = sum_d coef[d] * x[d, i, j] + coef[Din]   (pure VPU, dense tiles).

    coef_ref: SMEM [Din + 1] float32
    x_ref   : VMEM [Din, bs, 128] float32
    o_ref   : VMEM [bs, 128] float32
    """
    din = x_ref.shape[0]
    acc = x_ref[0] * coef_ref[0]
    for d in range(1, din):          # Din == 2: unrolled at trace time
        acc = acc + x_ref[d] * coef_ref[d]
    o_ref[...] = (acc + coef_ref[din]).astype(o_ref.dtype)


def _absolute_mlp_impl(x, params, *, bs_max=4096):
    """x: [N, 2] -> y: [N, 1], identical to lin4(lin3(lin2(lin1(x))))."""
    (w1, b1), (w2, b2), (w3, b3), (w4, b4) = params
    N, Din = x.shape

    # ---- exact trace-time fold of the identity-activation layer stack ----
    # (fp32 fold changes rounding order vs. layer-by-layer; matches to ~1e-5)
    w_eff = w1 @ w2 @ w3 @ w4                               # [Din, 1]
    b_eff = ((b1 @ w2 + b2) @ w3 + b3) @ w4 + b4            # [1, 1]
    coef = jnp.concatenate([w_eff[:, 0], b_eff[0, :]]).astype(jnp.float32)

    # ---- tiling: batch split into rows of 128 lanes, bs rows per grid step ----
    bs_max = max(8, (int(bs_max) // 8) * 8)    # guard: multiple of 8 sublanes
    r = pl.cdiv(N, 128)                        # number of 128-lane rows
    g = pl.cdiv(r, bs_max)                     # grid steps
    if r >= 2048:
        g = max(g, 2)                          # let both v7x cores stream data
    if g == 1:
        bs = r                                 # block == full dim: no 8-rounding
    else:
        bs = ((pl.cdiv(r, g) + 7) // 8) * 8    # multiple of 8 sublanes
    r_pad = g * bs

    # Feature-major, (sublane, lane)-dense layout: [Din, r_pad, 128].
    # Under jit, astype + pad + reshape + transpose fuse into a single pass.
    # (If callers can provide x feature-major upstream, this pass disappears.)
    x_r = jnp.pad(x.astype(jnp.float32), ((0, r_pad * 128 - N), (0, 0)))
    x_r = x_r.reshape(r_pad, 128, Din).transpose(2, 0, 1)   # [Din, r_pad, 128]

    y_r = pl.pallas_call(
        affine_kernel,
        out_shape=jax.ShapeDtypeStruct((r_pad, 128), jnp.float32),
        grid=(g,),
        in_specs=[
            # 3 folded coefficients, whole (tiny) array resident in SMEM.
            pl.BlockSpec(memory_space=pltpu.MemorySpace.SMEM),
            # Dense [Din, bs, 128] slab of feature-major x per grid step.
            pl.BlockSpec((Din, bs, 128), lambda i: (0, i, 0)),
        ],
        # Dense [bs, 128] output block: unmasked full-tile stores.
        out_specs=pl.BlockSpec((bs, 128), lambda i: (i, 0)),
        compiler_params=pltpu.CompilerParams(
            dimension_semantics=("parallel",),
            vmem_limit_bytes=32 * 1024 * 1024,
        ),
    )(coef, x_r)

    # NOTE: padded batch lanes evaluate to b_eff (not 0); they are sliced off here.
    return y_r.reshape(r_pad * 128)[:N].reshape(N, 1).astype(x.dtype)


absolute_mlp = jax.jit(_absolute_mlp_impl, static_argnames=("bs_max",))


def init_params(key):
    """Deterministic init matching nn.Linear shapes (uniform +-1/sqrt(fan_in)).
    Weights are stored transposed relative to PyTorch: [in, out]."""
    dims = [(2, 32), (32, 32), (32, 32), (32, 1)]
    params = []
    for (fan_in, fan_out) in dims:
        key, kw, kb = jax.random.split(key, 3)
        bound = 1.0 / jnp.sqrt(fan_in)
        w = jax.random.uniform(kw, (fan_in, fan_out), jnp.float32, -bound, bound)
        b = jax.random.uniform(kb, (1, fan_out), jnp.float32, -bound, bound)
        params.append((w, b))
    return params


@jax.jit
def reference(x, params):
    """Layer-by-layer reference, identical to the PyTorch forward."""
    h = x
    for (w, b) in params:
        h = h @ w + b
    return h


if __name__ == "__main__":
    key = jax.random.PRNGKey(0)
    key, kx1, kx2 = jax.random.split(key, 3)
    params = init_params(key)

    # Small case matching the module (batch=16, in_features=2): single block.
    x_small = jax.random.normal(kx1, (16, 2), jnp.float32)
    y_small = absolute_mlp(x_small, params)
    jax.block_until_ready(y_small)
    assert y_small.shape == (16, 1)
    assert jnp.allclose(y_small, reference(x_small, params), atol=1e-4, rtol=1e-4)

    # Ragged batch: pads only to the next 128 lanes (1027 -> 1152), single step.
    x_big = jax.random.normal(kx2, (1027, 2), jnp.float32)
    y_big = absolute_mlp(x_big, params)
    jax.block_until_ready(y_big)
    assert y_big.shape == (1027, 1)
    assert jnp.allclose(y_big, reference(x_big, params), atol=1e-4, rtol=1e-4)

    # Same ragged batch but forcing a multi-step grid (exercises the pipelined path).
    y_multi = absolute_mlp(x_big, params, bs_max=8)
    jax.block_until_ready(y_multi)
    assert y_multi.shape == (1027, 1)
    assert jnp.allclose(y_multi, reference(x_big, params), atol=1e-4, rtol=1e-4)

    print("KERNEL_OK")
</pallas_src>

<mosaic_0001>
module attributes {stable_mosaic.version = 11 : i64} {
  func.func @affine_kernel(%arg0: i32, %arg1: memref<3xf32, #tpu.memory_space<smem>>, %arg2: memref<2x1x128xf32, #tpu.memory_space<vmem>>, %arg3: memref<1x128xf32, #tpu.memory_space<vmem>>) attributes {dimension_semantics = [#tpu.dimension_semantics<parallel>], iteration_bounds = array<i64: 1>, scalar_prefetch = 0 : i64, scratch_operands = 0 : i64, tpu.core_type = #tpu.core_type<tc>, window_params = [{transform_indices = @transform_0, window_bounds = array<i64: 3>}, {transform_indices = @transform_1, window_bounds = array<i64: 2, 1, 128>}, {transform_indices = @transform_2, window_bounds = array<i64: 1, 128>}]} {
    %c0 = arith.constant 0 : index
    %c0_0 = arith.constant 0 : index
    %c0_1 = arith.constant 0 : index
    %0 = vector.load %arg2[%c0, %c0_0, %c0_1] : memref<2x1x128xf32, #tpu.memory_space<vmem>>, vector<1x1x128xf32>
    %1 = vector.shape_cast %0 : vector<1x1x128xf32> to vector<1x128xf32>
    %c0_2 = arith.constant 0 : index
    %2 = memref.load %arg1[%c0_2] : memref<3xf32, #tpu.memory_space<smem>>
    %3 = vector.broadcast %2 : f32 to vector<1x128xf32>
    %4 = arith.mulf %1, %3 : vector<1x128xf32>
    %c1 = arith.constant 1 : index
    %c0_3 = arith.constant 0 : index
    %c0_4 = arith.constant 0 : index
    %5 = vector.load %arg2[%c1, %c0_3, %c0_4] : memref<2x1x128xf32, #tpu.memory_space<vmem>>, vector<1x1x128xf32>
    %6 = vector.shape_cast %5 : vector<1x1x128xf32> to vector<1x128xf32>
    %c1_5 = arith.constant 1 : index
    %7 = memref.load %arg1[%c1_5] : memref<3xf32, #tpu.memory_space<smem>>
    %8 = vector.broadcast %7 : f32 to vector<1x128xf32>
    %9 = arith.mulf %6, %8 : vector<1x128xf32>
    %10 = arith.addf %4, %9 : vector<1x128xf32>
    %c2 = arith.constant 2 : index
    %11 = memref.load %arg1[%c2] : memref<3xf32, #tpu.memory_space<smem>>
    %12 = vector.broadcast %11 : f32 to vector<1x128xf32>
    %13 = arith.addf %10, %12 : vector<1x128xf32>
    %c0_6 = arith.constant 0 : index
    %c0_7 = arith.constant 0 : index
    %14 = vector.load %arg3[%c0_6, %c0_7] : memref<1x128xf32, #tpu.memory_space<vmem>>, vector<1x128xf32>
    tpu.vector_store %arg3[%c0_6, %c0_7], %13 {strides = array<i32>} : memref<1x128xf32, #tpu.memory_space<vmem>>, vector<1x128xf32>,
    return
  }
  func.func @transform_0(%arg0: i32) -> i32 {
    %c0_i32 = arith.constant 0 : i32
    %c0_i32_0 = arith.constant 0 : i32
    return %c0_i32 : i32
  }
  func.func @transform_1(%arg0: i32) -> (i32, i32, i32) {
    %c0_i32 = arith.constant 0 : i32
    %c0_i32_0 = arith.constant 0 : i32
    %c0_i32_1 = arith.constant 0 : i32
    return %c0_i32, %arg0, %c0_i32_0 : i32, i32, i32
  }
  func.func @transform_2(%arg0: i32) -> (i32, i32) {
    %c0_i32 = arith.constant 0 : i32
    %c0_i32_0 = arith.constant 0 : i32
    return %arg0, %c0_i32 : i32, i32
  }
}

</mosaic_0001>

<bundles_post_ra>
// kernel: _absolute_mlp_impl.1
= control target key start
LH: loop header
LB: loop body
LE: loop exit
PB: predicated region body
PF: predicated region fallthrough
CT: control target
= control target key end

     0   :  { %7 = vsyncpa [#allocation3], 0  ;;  %s61_s12 = smov [#allocation2]   ;;  %s89_s0 = inlined_call_operand.vmem [shape: f32[3], index: 0, kind: input, shape index: {}]   ;;  %s90_s1 = inlined_call_operand.vmem [shape: f32[2,1,128], index: 1, kind: input, shape index: {}]   ;;  %s91_s2 = inlined_call_operand.vmem [shape: f32[1,128], index: 2, kind: output, shape index: {}]  }
   0x1   :  { %s13_s11 = sshll.u32 %s89_s0, 4  ;;  %s14_s11 = int_to_ptr.vmem [resolvable:$true] %s13_s11 }
   0x2   :  { %16 = dma.vmem_to_smem %s14_s11, 16, %s61_s12, [#allocation3]  }
   0x3   :  { %59 = dma.done.wait [#allocation3], 16  }
   0x4   :  { %60 = vsyncadd [#allocation3], 4294967280 }
   0x5   :  { %23 = sfence }
   0x6   :  { %s25_s13 = sld [smem:[#allocation2]]  ;;  %v24_v0 = vld [vmem:[%s90_s1] sm:$0x1]  ;;  %v43_v1 = vld [vmem:[%s90_s1 + $0x1] sm:$0x1] }
   0x7   :  { %s44_s14 = sld [smem:[#allocation2 + $0x1]] }
   0x8   :  { %s45_s15 = sld [smem:[#allocation2 + $0x2]] }
   0xc   :  { %v26_v2 = vstv %s25_s13 }
   0xd   :  { %v27_v3 = vmul.f32 %v26_v2, %v24_v0  ;;  %v31_v4 = vstv %s44_s14 }
   0xe   :  { %v32_v5 = vmul.f32 %v43_v1, %v31_v4  ;;  %v35_v6 = vstv %s45_s15 }
  0x10   :  { %v33_v7 = vadd.f32 %v32_v5, %v27_v3 }
  0x12   :  { %v36_v8 = vadd.f32 %v35_v6, %v33_v7 }
  0x14   :  { %37 = vst [vmem:[%s91_s2] sm:$0x1] %v36_v8 }
  0x15   :  { %42 = vsyncpa [#allocation3], 1 }

</bundles_post_ra>
